<compile_context>
chip_gen: v6e
topology: v6e:2x2x1
jax: 0.10.0
libtpu: 0.0.40
codegen_flags: <defaults>
</compile_context>

<pallas_src>
import functools

import jax
import jax.numpy as jnp
from jax import lax
from jax.experimental import pallas as pl
from jax.experimental.pallas import tpu as pltpu


def _lstm_dqn_kernel(x_ref, state0_ref, w_rec_ref, b_all_ref, w_out_ref,
                     out_ref, gx_sc, *, num_actions):
    TB, I = x_ref.shape
    B = state0_ref.shape[0] // 2
    H = state0_ref.shape[1]
    T = TB // B
    NV = 1 + num_actions                       # fused [value | advantage] width

    # ---- static, sublane-aligned views of the packed parameters -------------
    wih = w_rec_ref[:I, :]                     # (I, 4H)
    whh = w_rec_ref[I:, :]                     # (H, 4H)  (loaded once, reused)
    b_lstm = b_all_ref[0:1, :]                 # (1, 4H)

    # ---- hoisted input projection: all time steps in one MXU matmul ---------
    gx_sc[...] = (jnp.dot(x_ref[...], wih,
                          preferred_element_type=jnp.float32)
                  + b_lstm)

    # ---- serial LSTM recurrence (only h @ W_hh^T on the critical path) ------
    # gate order after wrapper-side reordering: [i, f, o, g]
    def step(t, carry):
        h, c = carry
        row = pl.multiple_of(t * B, B)
        gates = (gx_sc[pl.ds(row, B), :]
                 + jnp.dot(h, whh, preferred_element_type=jnp.float32))
        sig = jax.nn.sigmoid(gates[:, :3 * H])   # i, f, o in one EUP pass
        g_g = jnp.tanh(gates[:, 3 * H:])         # g
        i_g = sig[:, 0 * H:1 * H]
        f_g = sig[:, 1 * H:2 * H]
        o_g = sig[:, 2 * H:3 * H]
        c_new = f_g * c + i_g * g_g
        h_new = o_g * jnp.tanh(c_new)
        return h_new, c_new

    h0 = state0_ref[:B, :]
    c0 = state0_ref[B:, :]
    h, c = lax.fori_loop(0, T, step, (h0, c0), unroll=True)

    # ---- dueling head: fc -> relu -> fused [value | advantage] matmul -------
    wfc = w_out_ref[:H, :H]                    # (H, H)
    whead = w_out_ref[H:, :NV]                 # (H, 1+O)
    bfc = b_all_ref[1:2, :H]                   # (1, H)
    bhead = b_all_ref[2:3, :NV]                # (1, 1+O)

    hid = jnp.maximum(
        jnp.dot(h, wfc, preferred_element_type=jnp.float32) + bfc, 0.0)
    head = (jnp.dot(hid, whead, preferred_element_type=jnp.float32)
            + bhead)                           # (B, 1+O); col 0 = V, cols 1: = A
    val = head[:, :1]
    adv = head[:, 1:]
    q = val + (adv - jnp.mean(adv, axis=1, keepdims=True))

    # ---- single lane-dense output store: [h_n | c_n | q | zero pad] ---------
    pad = out_ref.shape[1] - (2 * H + num_actions)
    out_ref[...] = jnp.concatenate(
        [h, c, q, jnp.zeros((B, pad), jnp.float32)], axis=1)


@functools.partial(jax.jit, static_argnames=("num_actions",))
def lstm_dqn_forward(x_btI, h0_1bh, c0_1bh, kparams, *, num_actions):
    """PyTorch-equivalent forward.  x_btI: (B, T, I); hidden: ((1,B,H),(1,B,H))."""
    B, T, I = x_btI.shape
    H = h0_1bh.shape[-1]
    O = num_actions
    assert B % 8 == 0, "B must be a multiple of 8 (sublane width)"

    # time-major, then flatten time*batch for the hoisted input projection.
    # TODO(synk): at production T*B*I, fold this transpose into the producer
    # (or keep x batch-major and read strided rows from gx_sc in-kernel).
    x_flat = jnp.transpose(x_btI, (1, 0, 2)).reshape(T * B, I)
    state0 = jnp.concatenate(
        [h0_1bh.reshape(B, H), c0_1bh.reshape(B, H)], axis=0)   # (2B, H)

    # lane-dense fused output width (>= 128, multiple of 128)
    P = max(128, ((2 * H + O + 127) // 128) * 128)

    vmem = functools.partial(pl.BlockSpec, memory_space=pltpu.MemorySpace.VMEM)

    out = pl.pallas_call(
        functools.partial(_lstm_dqn_kernel, num_actions=O),
        out_shape=jax.ShapeDtypeStruct((B, P), jnp.float32),
        in_specs=[vmem()] * 5,
        out_specs=vmem(),
        scratch_shapes=[pltpu.VMEM((T * B, 4 * H), jnp.float32)],
    )(x_flat, state0, kparams["w_rec"], kparams["b_all"], kparams["w_out"])

    hn = out[:, :H]
    cn = out[:, H:2 * H]
    q = out[:, 2 * H:2 * H + O]
    return q, (hn.reshape(1, B, H), cn.reshape(1, B, H))


def init_params(key, input_size, hidden_size, output_size):
    """PyTorch-shaped parameters (nn.LSTM / nn.Linear conventions)."""
    H, I, O = hidden_size, input_size, output_size
    ks = jax.random.split(key, 10)
    s = 1.0 / jnp.sqrt(H)
    u = lambda k, shape: jax.random.uniform(k, shape, jnp.float32, -s, s)
    return {
        "w_ih": u(ks[0], (4 * H, I)),
        "w_hh": u(ks[1], (4 * H, H)),
        "b_ih": u(ks[2], (4 * H,)),
        "b_hh": u(ks[3], (4 * H,)),
        "w_fc": u(ks[4], (H, H)),
        "b_fc": u(ks[5], (H,)),
        "w_vn": u(ks[6], (1, H)),
        "b_vn": u(ks[7], (1,)),
        "w_an": u(ks[8], (O, H)),
        "b_an": u(ks[9], (O,)),
    }


def prepare_kernel_params(p):
    """Pre-transpose, reorder gates (i,f,g,o)->(i,f,o,g), fuse V/A heads, and
    pack everything into 3 contiguous VMEM arguments."""
    H = p["w_hh"].shape[1]
    I = p["w_ih"].shape[1]
    O = p["w_an"].shape[0]
    NV = 1 + O

    perm = jnp.concatenate([jnp.arange(0, 2 * H),        # i, f
                            jnp.arange(3 * H, 4 * H),    # o
                            jnp.arange(2 * H, 3 * H)])   # g

    # recurrent weights: [W_ih^T ; W_hh^T] stacked along sublanes -> (I+H, 4H)
    wih_t = p["w_ih"][perm].T
    whh_t = p["w_hh"][perm].T
    w_rec = jnp.concatenate([wih_t, whh_t], axis=0)

    # biases: one (3, 4H) slab (rows: lstm / fc / head, zero-padded lanes)
    L = 4 * H
    b_lstm = (p["b_ih"] + p["b_hh"])[perm]
    bfc = p["b_fc"]
    bhead = jnp.concatenate([p["b_vn"], p["b_an"]])
    b_all = jnp.stack([
        b_lstm,
        jnp.pad(bfc, (0, L - H)),
        jnp.pad(bhead, (0, L - NV)),
    ], axis=0)

    # head weights: [W_fc^T ; [W_vn|W_an]^T] stacked along sublanes
    W = max(H, NV)
    wfc_t = p["w_fc"].T                                    # (H, H)
    whead = jnp.concatenate([p["w_vn"], p["w_an"]], 0).T   # (H, 1+O)
    w_out = jnp.concatenate([
        jnp.pad(wfc_t, ((0, 0), (0, W - H))),
        jnp.pad(whead, ((0, 0), (0, W - NV))),
    ], axis=0)                                             # (2H, W)

    # TODO(synk): cast w_rec / w_out to jnp.bfloat16 for v6e/v7x at production
    # sizes; kept float32 here so the toy-size numerics check stays tight.
    return {"w_rec": w_rec, "b_all": b_all, "w_out": w_out}


def _reference_forward(x, h0, c0, p):
    """Pure-JAX reference in original PyTorch layout / gate order."""
    B, T, I = x.shape
    H = p["w_hh"].shape[1]
    h = h0.reshape(B, H)
    c = c0.reshape(B, H)
    b = p["b_ih"] + p["b_hh"]
    for t in range(T):
        g = x[:, t, :] @ p["w_ih"].T + h @ p["w_hh"].T + b
        i = jax.nn.sigmoid(g[:, 0 * H:1 * H])
        f = jax.nn.sigmoid(g[:, 1 * H:2 * H])
        gg = jnp.tanh(g[:, 2 * H:3 * H])
        o = jax.nn.sigmoid(g[:, 3 * H:4 * H])
        c = f * c + i * gg
        h = o * jnp.tanh(c)
    hid = jnp.maximum(h @ p["w_fc"].T + p["b_fc"], 0.0)
    adv = hid @ p["w_an"].T + p["b_an"]
    val = hid @ p["w_vn"].T + p["b_vn"]
    q = val + (adv - jnp.mean(adv, axis=1, keepdims=True))
    return q, (h.reshape(1, B, H), c.reshape(1, B, H))


if __name__ == "__main__":
    B, T, I, H, O = 8, 8, 16, 32, 4

    key = jax.random.PRNGKey(0)
    k_x, k_p = jax.random.split(key)
    x = jax.random.normal(k_x, (B, T, I), jnp.float32)      # batch_first input
    h0 = jnp.zeros((1, B, H), jnp.float32)                  # init_hidden
    c0 = jnp.zeros((1, B, H), jnp.float32)
    params = init_params(k_p, I, H, O)
    kparams = prepare_kernel_params(params)

    q, (hn, cn) = lstm_dqn_forward(x, h0, c0, kparams, num_actions=O)
    jax.block_until_ready((q, hn, cn))

    q_ref, (hn_ref, cn_ref) = _reference_forward(x, h0, c0, params)
    assert q.shape == (B, O) and hn.shape == (1, B, H) and cn.shape == (1, B, H)
    assert jnp.allclose(q, q_ref, atol=1e-4), "q mismatch"
    assert jnp.allclose(hn, hn_ref, atol=1e-4), "h_n mismatch"
    assert jnp.allclose(cn, cn_ref, atol=1e-4), "c_n mismatch"

    print("KERNEL_OK")
</pallas_src>

<mosaic_0001>
module attributes {stable_mosaic.version = 11 : i64} {
  func.func @_lstm_dqn_kernel(%arg0: memref<64x16xf32, #tpu.memory_space<vmem>>, %arg1: memref<16x32xf32, #tpu.memory_space<vmem>>, %arg2: memref<48x128xf32, #tpu.memory_space<vmem>>, %arg3: memref<3x128xf32, #tpu.memory_space<vmem>>, %arg4: memref<64x32xf32, #tpu.memory_space<vmem>>, %arg5: memref<8x128xf32, #tpu.memory_space<vmem>>, %arg6: memref<64x128xf32, #tpu.memory_space<vmem>>) attributes {dimension_semantics = [], scalar_prefetch = 0 : i64, scratch_operands = 1 : i64, tpu.core_type = #tpu.core_type<tc>} {
    %c0 = arith.constant 0 : index
    %c0_0 = arith.constant 0 : index
    %0 = vector.load %arg2[%c0, %c0_0] : memref<48x128xf32, #tpu.memory_space<vmem>>, vector<16x128xf32>
    %c16 = arith.constant 16 : index
    %c0_1 = arith.constant 0 : index
    %1 = vector.load %arg2[%c16, %c0_1] : memref<48x128xf32, #tpu.memory_space<vmem>>, vector<32x128xf32>
    %c0_2 = arith.constant 0 : index
    %c0_3 = arith.constant 0 : index
    %2 = vector.load %arg3[%c0_2, %c0_3] : memref<3x128xf32, #tpu.memory_space<vmem>>, vector<1x128xf32>
    %c0_4 = arith.constant 0 : index
    %c0_5 = arith.constant 0 : index
    %3 = vector.load %arg0[%c0_4, %c0_5] : memref<64x16xf32, #tpu.memory_space<vmem>>, vector<64x16xf32>
    %cst = arith.constant dense<0.000000e+00> : vector<64x128xf32>
    %4 = tpu.matmul %3, %0, %cst {dimension_numbers = #tpu.dot_dimension_numbers<[1], [0], [0], [1], [0, 0, 1, 1], [], []>} : vector<64x16xf32>, vector<16x128xf32>, vector<64x128xf32> -> vector<64x128xf32>
    %5 = vector.broadcast %2 : vector<1x128xf32> to vector<64x128xf32>
    %6 = arith.addf %4, %5 : vector<64x128xf32>
    %c0_6 = arith.constant 0 : index
    %c0_7 = arith.constant 0 : index
    %7 = vector.load %arg6[%c0_6, %c0_7] : memref<64x128xf32, #tpu.memory_space<vmem>>, vector<64x128xf32>
    tpu.vector_store %arg6[%c0_6, %c0_7], %6 {strides = array<i32>} : memref<64x128xf32, #tpu.memory_space<vmem>>, vector<64x128xf32>,
    %c0_8 = arith.constant 0 : index
    %c0_9 = arith.constant 0 : index
    %8 = vector.load %arg1[%c0_8, %c0_9] : memref<16x32xf32, #tpu.memory_space<vmem>>, vector<8x32xf32>
    %c8 = arith.constant 8 : index
    %c0_10 = arith.constant 0 : index
    %9 = vector.load %arg1[%c8, %c0_10] : memref<16x32xf32, #tpu.memory_space<vmem>>, vector<8x32xf32>
    %c0_i32 = arith.constant 0 : i32
    %c8_i32 = arith.constant 8 : i32
    %10 = arith.muli %c0_i32, %c8_i32 : i32
    %11 = tpu.assume_multiple %10, 8 : i32
    %12 = arith.index_cast %11 : i32 to index
    %c0_11 = arith.constant 0 : index
    %13 = vector.load %arg6[%12, %c0_11] : memref<64x128xf32, #tpu.memory_space<vmem>>, vector<8x128xf32>
    %cst_12 = arith.constant dense<0.000000e+00> : vector<8x128xf32>
    %14 = tpu.matmul %8, %1, %cst_12 {dimension_numbers = #tpu.dot_dimension_numbers<[1], [0], [0], [1], [0, 0, 1, 1], [], []>} : vector<8x32xf32>, vector<32x128xf32>, vector<8x128xf32> -> vector<8x128xf32>
    %15 = arith.addf %13, %14 : vector<8x128xf32>
    %16 = vector.extract_strided_slice %15 {offsets = [0, 0], sizes = [8, 96], strides = [1, 1]} : vector<8x128xf32> to vector<8x96xf32>
    %17 = arith.negf %16 : vector<8x96xf32>
    %18 = math.exp %17 : vector<8x96xf32>
    %cst_13 = arith.constant 1.000000e+00 : f32
    %19 = vector.broadcast %cst_13 : f32 to vector<8x96xf32>
    %20 = arith.addf %19, %18 : vector<8x96xf32>
    %21 = arith.divf %19, %20 : vector<8x96xf32>
    %22 = vector.extract_strided_slice %15 {offsets = [0, 96], sizes = [8, 32], strides = [1, 1]} : vector<8x128xf32> to vector<8x32xf32>
    %23 = math.tanh %22 : vector<8x32xf32>
    %24 = vector.extract_strided_slice %21 {offsets = [0, 0], sizes = [8, 32], strides = [1, 1]} : vector<8x96xf32> to vector<8x32xf32>
    %25 = vector.extract_strided_slice %21 {offsets = [0, 32], sizes = [8, 32], strides = [1, 1]} : vector<8x96xf32> to vector<8x32xf32>
    %26 = vector.extract_strided_slice %21 {offsets = [0, 64], sizes = [8, 32], strides = [1, 1]} : vector<8x96xf32> to vector<8x32xf32>
    %27 = arith.mulf %25, %9 : vector<8x32xf32>
    %28 = arith.mulf %24, %23 : vector<8x32xf32>
    %29 = arith.addf %27, %28 : vector<8x32xf32>
    %30 = math.tanh %29 : vector<8x32xf32>
    %31 = arith.mulf %26, %30 : vector<8x32xf32>
    %c1_i32 = arith.constant 1 : i32
    %c8_i32_14 = arith.constant 8 : i32
    %32 = arith.muli %c1_i32, %c8_i32_14 : i32
    %33 = tpu.assume_multiple %32, 8 : i32
    %34 = arith.index_cast %33 : i32 to index
    %c0_15 = arith.constant 0 : index
    %35 = vector.load %arg6[%34, %c0_15] : memref<64x128xf32, #tpu.memory_space<vmem>>, vector<8x128xf32>
    %cst_16 = arith.constant dense<0.000000e+00> : vector<8x128xf32>
    %36 = tpu.matmul %31, %1, %cst_16 {dimension_numbers = #tpu.dot_dimension_numbers<[1], [0], [0], [1], [0, 0, 1, 1], [], []>} : vector<8x32xf32>, vector<32x128xf32>, vector<8x128xf32> -> vector<8x128xf32>
    %37 = arith.addf %35, %36 : vector<8x128xf32>
    %38 = vector.extract_strided_slice %37 {offsets = [0, 0], sizes = [8, 96], strides = [1, 1]} : vector<8x128xf32> to vector<8x96xf32>
    %39 = arith.negf %38 : vector<8x96xf32>
    %40 = math.exp %39 : vector<8x96xf32>
    %cst_17 = arith.constant 1.000000e+00 : f32
    %41 = vector.broadcast %cst_17 : f32 to vector<8x96xf32>
    %42 = arith.addf %41, %40 : vector<8x96xf32>
    %43 = arith.divf %41, %42 : vector<8x96xf32>
    %44 = vector.extract_strided_slice %37 {offsets = [0, 96], sizes = [8, 32], strides = [1, 1]} : vector<8x128xf32> to vector<8x32xf32>
    %45 = math.tanh %44 : vector<8x32xf32>
    %46 = vector.extract_strided_slice %43 {offsets = [0, 0], sizes = [8, 32], strides = [1, 1]} : vector<8x96xf32> to vector<8x32xf32>
    %47 = vector.extract_strided_slice %43 {offsets = [0, 32], sizes = [8, 32], strides = [1, 1]} : vector<8x96xf32> to vector<8x32xf32>
    %48 = vector.extract_strided_slice %43 {offsets = [0, 64], sizes = [8, 32], strides = [1, 1]} : vector<8x96xf32> to vector<8x32xf32>
    %49 = arith.mulf %47, %29 : vector<8x32xf32>
    %50 = arith.mulf %46, %45 : vector<8x32xf32>
    %51 = arith.addf %49, %50 : vector<8x32xf32>
    %52 = math.tanh %51 : vector<8x32xf32>
    %53 = arith.mulf %48, %52 : vector<8x32xf32>
    %c2_i32 = arith.constant 2 : i32
    %c8_i32_18 = arith.constant 8 : i32
    %54 = arith.muli %c2_i32, %c8_i32_18 : i32
    %55 = tpu.assume_multiple %54, 8 : i32
    %56 = arith.index_cast %55 : i32 to index
    %c0_19 = arith.constant 0 : index
    %57 = vector.load %arg6[%56, %c0_19] : memref<64x128xf32, #tpu.memory_space<vmem>>, vector<8x128xf32>
    %cst_20 = arith.constant dense<0.000000e+00> : vector<8x128xf32>
    %58 = tpu.matmul %53, %1, %cst_20 {dimension_numbers = #tpu.dot_dimension_numbers<[1], [0], [0], [1], [0, 0, 1, 1], [], []>} : vector<8x32xf32>, vector<32x128xf32>, vector<8x128xf32> -> vector<8x128xf32>
    %59 = arith.addf %57, %58 : vector<8x128xf32>
    %60 = vector.extract_strided_slice %59 {offsets = [0, 0], sizes = [8, 96], strides = [1, 1]} : vector<8x128xf32> to vector<8x96xf32>
    %61 = arith.negf %60 : vector<8x96xf32>
    %62 = math.exp %61 : vector<8x96xf32>
    %cst_21 = arith.constant 1.000000e+00 : f32
    %63 = vector.broadcast %cst_21 : f32 to vector<8x96xf32>
    %64 = arith.addf %63, %62 : vector<8x96xf32>
    %65 = arith.divf %63, %64 : vector<8x96xf32>
    %66 = vector.extract_strided_slice %59 {offsets = [0, 96], sizes = [8, 32], strides = [1, 1]} : vector<8x128xf32> to vector<8x32xf32>
    %67 = math.tanh %66 : vector<8x32xf32>
    %68 = vector.extract_strided_slice %65 {offsets = [0, 0], sizes = [8, 32], strides = [1, 1]} : vector<8x96xf32> to vector<8x32xf32>
    %69 = vector.extract_strided_slice %65 {offsets = [0, 32], sizes = [8, 32], strides = [1, 1]} : vector<8x96xf32> to vector<8x32xf32>
    %70 = vector.extract_strided_slice %65 {offsets = [0, 64], sizes = [8, 32], strides = [1, 1]} : vector<8x96xf32> to vector<8x32xf32>
    %71 = arith.mulf %69, %51 : vector<8x32xf32>
    %72 = arith.mulf %68, %67 : vector<8x32xf32>
    %73 = arith.addf %71, %72 : vector<8x32xf32>
    %74 = math.tanh %73 : vector<8x32xf32>
    %75 = arith.mulf %70, %74 : vector<8x32xf32>
    %c3_i32 = arith.constant 3 : i32
    %c8_i32_22 = arith.constant 8 : i32
    %76 = arith.muli %c3_i32, %c8_i32_22 : i32
    %77 = tpu.assume_multiple %76, 8 : i32
    %78 = arith.index_cast %77 : i32 to index
    %c0_23 = arith.constant 0 : index
    %79 = vector.load %arg6[%78, %c0_23] : memref<64x128xf32, #tpu.memory_space<vmem>>, vector<8x128xf32>
    %cst_24 = arith.constant dense<0.000000e+00> : vector<8x128xf32>
    %80 = tpu.matmul %75, %1, %cst_24 {dimension_numbers = #tpu.dot_dimension_numbers<[1], [0], [0], [1], [0, 0, 1, 1], [], []>} : vector<8x32xf32>, vector<32x128xf32>, vector<8x128xf32> -> vector<8x128xf32>
    %81 = arith.addf %79, %80 : vector<8x128xf32>
    %82 = vector.extract_strided_slice %81 {offsets = [0, 0], sizes = [8, 96], strides = [1, 1]} : vector<8x128xf32> to vector<8x96xf32>
    %83 = arith.negf %82 : vector<8x96xf32>
    %84 = math.exp %83 : vector<8x96xf32>
    %cst_25 = arith.constant 1.000000e+00 : f32
    %85 = vector.broadcast %cst_25 : f32 to vector<8x96xf32>
    %86 = arith.addf %85, %84 : vector<8x96xf32>
    %87 = arith.divf %85, %86 : vector<8x96xf32>
    %88 = vector.extract_strided_slice %81 {offsets = [0, 96], sizes = [8, 32], strides = [1, 1]} : vector<8x128xf32> to vector<8x32xf32>
    %89 = math.tanh %88 : vector<8x32xf32>
    %90 = vector.extract_strided_slice %87 {offsets = [0, 0], sizes = [8, 32], strides = [1, 1]} : vector<8x96xf32> to vector<8x32xf32>
    %91 = vector.extract_strided_slice %87 {offsets = [0, 32], sizes = [8, 32], strides = [1, 1]} : vector<8x96xf32> to vector<8x32xf32>
    %92 = vector.extract_strided_slice %87 {offsets = [0, 64], sizes = [8, 32], strides = [1, 1]} : vector<8x96xf32> to vector<8x32xf32>
    %93 = arith.mulf %91, %73 : vector<8x32xf32>
    %94 = arith.mulf %90, %89 : vector<8x32xf32>
    %95 = arith.addf %93, %94 : vector<8x32xf32>
    %96 = math.tanh %95 : vector<8x32xf32>
    %97 = arith.mulf %92, %96 : vector<8x32xf32>
    %c4_i32 = arith.constant 4 : i32
    %c8_i32_26 = arith.constant 8 : i32
    %98 = arith.muli %c4_i32, %c8_i32_26 : i32
    %99 = tpu.assume_multiple %98, 8 : i32
    %100 = arith.index_cast %99 : i32 to index
    %c0_27 = arith.constant 0 : index
    %101 = vector.load %arg6[%100, %c0_27] : memref<64x128xf32, #tpu.memory_space<vmem>>, vector<8x128xf32>
    %cst_28 = arith.constant dense<0.000000e+00> : vector<8x128xf32>
    %102 = tpu.matmul %97, %1, %cst_28 {dimension_numbers = #tpu.dot_dimension_numbers<[1], [0], [0], [1], [0, 0, 1, 1], [], []>} : vector<8x32xf32>, vector<32x128xf32>, vector<8x128xf32> -> vector<8x128xf32>
    %103 = arith.addf %101, %102 : vector<8x128xf32>
    %104 = vector.extract_strided_slice %103 {offsets = [0, 0], sizes = [8, 96], strides = [1, 1]} : vector<8x128xf32> to vector<8x96xf32>
    %105 = arith.negf %104 : vector<8x96xf32>
    %106 = math.exp %105 : vector<8x96xf32>
    %cst_29 = arith.constant 1.000000e+00 : f32
    %107 = vector.broadcast %cst_29 : f32 to vector<8x96xf32>
    %108 = arith.addf %107, %106 : vector<8x96xf32>
    %109 = arith.divf %107, %108 : vector<8x96xf32>
    %110 = vector.extract_strided_slice %103 {offsets = [0, 96], sizes = [8, 32], strides = [1, 1]} : vector<8x128xf32> to vector<8x32xf32>
    %111 = math.tanh %110 : vector<8x32xf32>
    %112 = vector.extract_strided_slice %109 {offsets = [0, 0], sizes = [8, 32], strides = [1, 1]} : vector<8x96xf32> to vector<8x32xf32>
    %113 = vector.extract_strided_slice %109 {offsets = [0, 32], sizes = [8, 32], strides = [1, 1]} : vector<8x96xf32> to vector<8x32xf32>
    %114 = vector.extract_strided_slice %109 {offsets = [0, 64], sizes = [8, 32], strides = [1, 1]} : vector<8x96xf32> to vector<8x32xf32>
    %115 = arith.mulf %113, %95 : vector<8x32xf32>
    %116 = arith.mulf %112, %111 : vector<8x32xf32>
    %117 = arith.addf %115, %116 : vector<8x32xf32>
    %118 = math.tanh %117 : vector<8x32xf32>
    %119 = arith.mulf %114, %118 : vector<8x32xf32>
    %c5_i32 = arith.constant 5 : i32
    %c8_i32_30 = arith.constant 8 : i32
    %120 = arith.muli %c5_i32, %c8_i32_30 : i32
    %121 = tpu.assume_multiple %120, 8 : i32
    %122 = arith.index_cast %121 : i32 to index
    %c0_31 = arith.constant 0 : index
    %123 = vector.load %arg6[%122, %c0_31] : memref<64x128xf32, #tpu.memory_space<vmem>>, vector<8x128xf32>
    %cst_32 = arith.constant dense<0.000000e+00> : vector<8x128xf32>
    %124 = tpu.matmul %119, %1, %cst_32 {dimension_numbers = #tpu.dot_dimension_numbers<[1], [0], [0], [1], [0, 0, 1, 1], [], []>} : vector<8x32xf32>, vector<32x128xf32>, vector<8x128xf32> -> vector<8x128xf32>
    %125 = arith.addf %123, %124 : vector<8x128xf32>
    %126 = vector.extract_strided_slice %125 {offsets = [0, 0], sizes = [8, 96], strides = [1, 1]} : vector<8x128xf32> to vector<8x96xf32>
    %127 = arith.negf %126 : vector<8x96xf32>
    %128 = math.exp %127 : vector<8x96xf32>
    %cst_33 = arith.constant 1.000000e+00 : f32
    %129 = vector.broadcast %cst_33 : f32 to vector<8x96xf32>
    %130 = arith.addf %129, %128 : vector<8x96xf32>
    %131 = arith.divf %129, %130 : vector<8x96xf32>
    %132 = vector.extract_strided_slice %125 {offsets = [0, 96], sizes = [8, 32], strides = [1, 1]} : vector<8x128xf32> to vector<8x32xf32>
    %133 = math.tanh %132 : vector<8x32xf32>
    %134 = vector.extract_strided_slice %131 {offsets = [0, 0], sizes = [8, 32], strides = [1, 1]} : vector<8x96xf32> to vector<8x32xf32>
    %135 = vector.extract_strided_slice %131 {offsets = [0, 32], sizes = [8, 32], strides = [1, 1]} : vector<8x96xf32> to vector<8x32xf32>
    %136 = vector.extract_strided_slice %131 {offsets = [0, 64], sizes = [8, 32], strides = [1, 1]} : vector<8x96xf32> to vector<8x32xf32>
    %137 = arith.mulf %135, %117 : vector<8x32xf32>
    %138 = arith.mulf %134, %133 : vector<8x32xf32>
    %139 = arith.addf %137, %138 : vector<8x32xf32>
    %140 = math.tanh %139 : vector<8x32xf32>
    %141 = arith.mulf %136, %140 : vector<8x32xf32>
    %c6_i32 = arith.constant 6 : i32
    %c8_i32_34 = arith.constant 8 : i32
    %142 = arith.muli %c6_i32, %c8_i32_34 : i32
    %143 = tpu.assume_multiple %142, 8 : i32
    %144 = arith.index_cast %143 : i32 to index
    %c0_35 = arith.constant 0 : index
    %145 = vector.load %arg6[%144, %c0_35] : memref<64x128xf32, #tpu.memory_space<vmem>>, vector<8x128xf32>
    %cst_36 = arith.constant dense<0.000000e+00> : vector<8x128xf32>
    %146 = tpu.matmul %141, %1, %cst_36 {dimension_numbers = #tpu.dot_dimension_numbers<[1], [0], [0], [1], [0, 0, 1, 1], [], []>} : vector<8x32xf32>, vector<32x128xf32>, vector<8x128xf32> -> vector<8x128xf32>
    %147 = arith.addf %145, %146 : vector<8x128xf32>
    %148 = vector.extract_strided_slice %147 {offsets = [0, 0], sizes = [8, 96], strides = [1, 1]} : vector<8x128xf32> to vector<8x96xf32>
    %149 = arith.negf %148 : vector<8x96xf32>
    %150 = math.exp %149 : vector<8x96xf32>
    %cst_37 = arith.constant 1.000000e+00 : f32
    %151 = vector.broadcast %cst_37 : f32 to vector<8x96xf32>
    %152 = arith.addf %151, %150 : vector<8x96xf32>
    %153 = arith.divf %151, %152 : vector<8x96xf32>
    %154 = vector.extract_strided_slice %147 {offsets = [0, 96], sizes = [8, 32], strides = [1, 1]} : vector<8x128xf32> to vector<8x32xf32>
    %155 = math.tanh %154 : vector<8x32xf32>
    %156 = vector.extract_strided_slice %153 {offsets = [0, 0], sizes = [8, 32], strides = [1, 1]} : vector<8x96xf32> to vector<8x32xf32>
    %157 = vector.extract_strided_slice %153 {offsets = [0, 32], sizes = [8, 32], strides = [1, 1]} : vector<8x96xf32> to vector<8x32xf32>
    %158 = vector.extract_strided_slice %153 {offsets = [0, 64], sizes = [8, 32], strides = [1, 1]} : vector<8x96xf32> to vector<8x32xf32>
    %159 = arith.mulf %157, %139 : vector<8x32xf32>
    %160 = arith.mulf %156, %155 : vector<8x32xf32>
    %161 = arith.addf %159, %160 : vector<8x32xf32>
    %162 = math.tanh %161 : vector<8x32xf32>
    %163 = arith.mulf %158, %162 : vector<8x32xf32>
    %c7_i32 = arith.constant 7 : i32
    %c8_i32_38 = arith.constant 8 : i32
    %164 = arith.muli %c7_i32, %c8_i32_38 : i32
    %165 = tpu.assume_multiple %164, 8 : i32
    %166 = arith.index_cast %165 : i32 to index
    %c0_39 = arith.constant 0 : index
    %167 = vector.load %arg6[%166, %c0_39] : memref<64x128xf32, #tpu.memory_space<vmem>>, vector<8x128xf32>
    %cst_40 = arith.constant dense<0.000000e+00> : vector<8x128xf32>
    %168 = tpu.matmul %163, %1, %cst_40 {dimension_numbers = #tpu.dot_dimension_numbers<[1], [0], [0], [1], [0, 0, 1, 1], [], []>} : vector<8x32xf32>, vector<32x128xf32>, vector<8x128xf32> -> vector<8x128xf32>
    %169 = arith.addf %167, %168 : vector<8x128xf32>
    %170 = vector.extract_strided_slice %169 {offsets = [0, 0], sizes = [8, 96], strides = [1, 1]} : vector<8x128xf32> to vector<8x96xf32>
    %171 = arith.negf %170 : vector<8x96xf32>
    %172 = math.exp %171 : vector<8x96xf32>
    %cst_41 = arith.constant 1.000000e+00 : f32
    %173 = vector.broadcast %cst_41 : f32 to vector<8x96xf32>
    %174 = arith.addf %173, %172 : vector<8x96xf32>
    %175 = arith.divf %173, %174 : vector<8x96xf32>
    %176 = vector.extract_strided_slice %169 {offsets = [0, 96], sizes = [8, 32], strides = [1, 1]} : vector<8x128xf32> to vector<8x32xf32>
    %177 = math.tanh %176 : vector<8x32xf32>
    %178 = vector.extract_strided_slice %175 {offsets = [0, 0], sizes = [8, 32], strides = [1, 1]} : vector<8x96xf32> to vector<8x32xf32>
    %179 = vector.extract_strided_slice %175 {offsets = [0, 32], sizes = [8, 32], strides = [1, 1]} : vector<8x96xf32> to vector<8x32xf32>
    %180 = vector.extract_strided_slice %175 {offsets = [0, 64], sizes = [8, 32], strides = [1, 1]} : vector<8x96xf32> to vector<8x32xf32>
    %181 = arith.mulf %179, %161 : vector<8x32xf32>
    %182 = arith.mulf %178, %177 : vector<8x32xf32>
    %183 = arith.addf %181, %182 : vector<8x32xf32>
    %184 = math.tanh %183 : vector<8x32xf32>
    %185 = arith.mulf %180, %184 : vector<8x32xf32>
    %c8_i32_42 = arith.constant 8 : i32
    %c0_43 = arith.constant 0 : index
    %c0_44 = arith.constant 0 : index
    %186 = vector.load %arg4[%c0_43, %c0_44] : memref<64x32xf32, #tpu.memory_space<vmem>>, vector<32x32xf32>
    %c32 = arith.constant 32 : index
    %c0_45 = arith.constant 0 : index
    %187 = vector.load %arg4[%c32, %c0_45] : memref<64x32xf32, #tpu.memory_space<vmem>>, vector<32x5xf32>
    %c1 = arith.constant 1 : index
    %c0_46 = arith.constant 0 : index
    %188 = vector.load %arg3[%c1, %c0_46] : memref<3x128xf32, #tpu.memory_space<vmem>>, vector<1x32xf32>
    %c2 = arith.constant 2 : index
    %c0_47 = arith.constant 0 : index
    %189 = vector.load %arg3[%c2, %c0_47] : memref<3x128xf32, #tpu.memory_space<vmem>>, vector<1x5xf32>
    %cst_48 = arith.constant dense<0.000000e+00> : vector<8x32xf32>
    %190 = tpu.matmul %185, %186, %cst_48 {dimension_numbers = #tpu.dot_dimension_numbers<[1], [0], [0], [1], [0, 0, 1, 1], [], []>} : vector<8x32xf32>, vector<32x32xf32>, vector<8x32xf32> -> vector<8x32xf32>
    %191 = vector.broadcast %188 : vector<1x32xf32> to vector<8x32xf32>
    %192 = arith.addf %190, %191 : vector<8x32xf32>
    %cst_49 = arith.constant 0.000000e+00 : f32
    %193 = vector.broadcast %cst_49 : f32 to vector<8x32xf32>
    %194 = arith.maximumf %192, %193 : vector<8x32xf32>
    %cst_50 = arith.constant dense<0.000000e+00> : vector<8x5xf32>
    %195 = tpu.matmul %194, %187, %cst_50 {dimension_numbers = #tpu.dot_dimension_numbers<[1], [0], [0], [1], [0, 0, 1, 1], [], []>} : vector<8x32xf32>, vector<32x5xf32>, vector<8x5xf32> -> vector<8x5xf32>
    %196 = vector.broadcast %189 : vector<1x5xf32> to vector<8x5xf32>
    %197 = arith.addf %195, %196 : vector<8x5xf32>
    %198 = vector.extract_strided_slice %197 {offsets = [0, 0], sizes = [8, 1], strides = [1, 1]} : vector<8x5xf32> to vector<8x1xf32>
    %199 = vector.extract_strided_slice %197 {offsets = [0, 1], sizes = [8, 4], strides = [1, 1]} : vector<8x5xf32> to vector<8x4xf32>
    %cst_51 = arith.constant dense<0.000000e+00> : vector<8xf32>
    %200 = vector.multi_reduction <add>, %199, %cst_51 [1] : vector<8x4xf32> to vector<8xf32>
    %201 = vector.shape_cast %200 : vector<8xf32> to vector<8x1xf32>
    %cst_52 = arith.constant 4.000000e+00 : f32
    %202 = vector.broadcast %cst_52 : f32 to vector<8x1xf32>
    %203 = arith.divf %201, %202 : vector<8x1xf32>
    %204 = vector.broadcast %203 : vector<8x1xf32> to vector<8x4xf32>
    %205 = arith.subf %199, %204 : vector<8x4xf32>
    %206 = vector.broadcast %198 : vector<8x1xf32> to vector<8x4xf32>
    %207 = arith.addf %206, %205 : vector<8x4xf32>
    %cst_53 = arith.constant 0.000000e+00 : f32
    %208 = vector.broadcast %cst_53 : f32 to vector<8x60xf32>
    %209 = tpu.concatenate %185, %183, %207, %208 in 1 : vector<8x32xf32>, vector<8x32xf32>, vector<8x4xf32>, vector<8x60xf32> -> vector<8x128xf32>
    %c0_54 = arith.constant 0 : index
    %c0_55 = arith.constant 0 : index
    %210 = vector.load %arg5[%c0_54, %c0_55] : memref<8x128xf32, #tpu.memory_space<vmem>>, vector<8x128xf32>
    tpu.vector_store %arg5[%c0_54, %c0_55], %209 {strides = array<i32>} : memref<8x128xf32, #tpu.memory_space<vmem>>, vector<8x128xf32>,
    return
  }
}

</mosaic_0001>

<bundles_post_ra>
// kernel: lstm_dqn_forward.1
= control target key start
LH: loop header
LB: loop body
LE: loop exit
PB: predicated region body
PF: predicated region fallthrough
CT: control target
= control target key end

     0   :  { %v1483_v0 = vmov 0.0   ;;  %vm1484_vm0 = vmmov 0   ;;  %vm39_vm1 = vcmask 130048   ;;  %vm180_vm2 = vcmask 261120   ;;  %s1485_s12 = smov 32   ;;  %s1489_s19 = smov 63   ;;  %s1778_s2 = inlined_call_operand.vmem [shape: f32[48,128], index: 2, kind: input, shape index: {}]   ;;  %s1779_s0 = inlined_call_operand.vmem [shape: f32[64,16], index: 0, kind: input, shape index: {}]   ;;  %s1780_s1 = inlined_call_operand.vmem [shape: f32[16,32], index: 1, kind: input, shape index: {}]   ;;  %s1781_s3 = inlined_call_operand.vmem [shape: f32[3,128], index: 3, kind: input, shape index: {}]   ;;  %s1782_s4 = inlined_call_operand.vmem [shape: f32[64,32], index: 4, kind: input, shape index: {}]   ;;  %s1783_s5 = inlined_call_operand.vmem [shape: f32[8,128], index: 5, kind: output, shape index: {}]  }
   0x1   :  { %1300 = vmatprep.subr.mxu1 %v1483_v0  ;;  %v21_v1 = vld [vmem:[%s1778_s2 + $0x8] sm:$0xff]  ;;  %v20_v3 = vld [vmem:[%s1778_s2] sm:$0xff]  ;;  %1308 = vmatprep.mubr.msk.f32.mxu1 %vm1484_vm0, %v1483_v0  ;;  %v1551_v7 = vld [vmem:[%s1778_s2 + $0x18] sm:$0xff]  ;;  %vm1168_vm3 = vcmask 31744   ;;  %vm1186_vm4 = vcmask 523264   ;;  %vm1188_vm5 = vcmask 556032  }
   0x2   :  { %v1527_v2 = vld [vmem:[%s1778_s2 + $0x28] sm:$0xff]  ;;  %1284 = vmatprep.subr.mxu0 %v21_v1  ;;  %v1538_v4 = vld [vmem:[%s1778_s2 + $0x20] sm:$0xff]  ;;  %v1559_v8 = vld [vmem:[%s1778_s2 + $0x10] sm:$0xff] }
   0x3   :  { %1301 = vmatpush3.msra.mxu1 %v1527_v2  ;;  %v27_v5 = vld [vmem:[%s1779_s0] sm:$0xff]  ;;  %1285 = vmatpush3.msra.mxu0 %v21_v1  ;;  %v28_v6 = vld [vmem:[%s1779_s0 + $0x8] sm:$0xff]  ;;  %v29_v47 = vld [vmem:[%s1779_s0 + $0x10] sm:$0xff] }
   0x4   :  { %1302 = vmatprep.subr.mxu1 %v1483_v0  ;;  %1286 = vmatprep.subr.mxu0 %v20_v3  ;;  %v177_v9 = vld [vmem:[%s1780_s1] sm:$0xff]  ;;  %v178_v18 = vld [vmem:[%s1780_s1 + $0x8] sm:$0xff]  ;;  %s1486_s1 = smov 64   ;;  %v30_v48 = vld [vmem:[%s1779_s0 + $0x18] sm:$0xff] }
   0x5   :  { %1303 = vmatpush3.msra.mxu1 %v1538_v4  ;;  %1287 = vmatpush3.msra.mxu0 %v20_v3  ;;  %v1591_v11 = vld [vmem:[%s1781_s3] ss:$0 sm:$0xff]  ;;  %v32_v50 = vld [vmem:[%s1779_s0 + $0x28] sm:$0xff]  ;;  %v33_v51 = vld [vmem:[%s1779_s0 + $0x30] sm:$0xff] }
   0x6   :  { %1288 = vmatprep.mubr.msk.f32.mxu0 %vm39_vm1, %v27_v5  ;;  %1304 = vmatprep.subr.mxu1 %v1483_v0  ;;  %v31_v49 = vld [vmem:[%s1779_s0 + $0x20] sm:$0xff]  ;;  %v34_v52 = vld [vmem:[%s1779_s0 + $0x38] sm:$0xff] }
   0x7   :  { %1289 = vmatmul.mubr.msk.f32.vlgmr.msra.gmra.mxu0 %vm39_vm1, %v28_v6  ;;  %1305 = vmatpush3.msra.mxu1 %v1551_v7 }
   0x8   :  { %1322 = vmatprep.subr.mxu0 %v1483_v0  ;;  %1306 = vmatprep.subr.mxu1 %v1483_v0 }
   0x9   :  { %1323 = vmatpush3.msra.mxu0 %v1527_v2  ;;  %1307 = vmatpush3.msra.mxu1 %v1559_v8 }
   0xa   :  { %1324 = vmatprep.subr.mxu0 %v1483_v0  ;;  %1309 = vmatmul.mubr.msk.f32.vlgmr.msra.gmra.mxu1 %vm180_vm2, %v177_v9 }
   0xb   :  { %1311 = vmatprep.subr.mxu1 %v1483_v0  ;;  %1319 = vmatprep.mubr.msk.f32.mxu1 %vm1484_vm0, %v1483_v0 }
   0xc   :  { %1312 = vmatpush3.msra.mxu1 %v1527_v2  ;;  %1325 = vmatpush3.msra.mxu0 %v1538_v4 }
   0xd   :  { %1313 = vmatprep.subr.mxu1 %v1483_v0  ;;  %1326 = vmatprep.subr.mxu0 %v1483_v0 }
   0xe   :  { %1314 = vmatpush3.msra.mxu1 %v1538_v4  ;;  %1327 = vmatpush3.msra.mxu0 %v1551_v7 }
   0xf   :  { %1315 = vmatprep.subr.mxu1 %v1483_v0  ;;  %1328 = vmatprep.subr.mxu0 %v1483_v0 }
  0x10   :  { %1316 = vmatpush3.msra.mxu1 %v1551_v7  ;;  %1329 = vmatpush3.msra.mxu0 %v1559_v8 }
  0x11   :  { %1317 = vmatprep.subr.mxu1 %v1483_v0  ;;  %1344 = vmatprep.subr.mxu0 %v1483_v0 }
  0x12   :  { %1318 = vmatpush3.msra.mxu1 %v1559_v8  ;;  %1291 = vmatprep.mubr.msk.f32.mxu0 %vm39_vm1, %v29_v47 }
  0x13   :  { %1333 = vmatprep.subr.mxu1 %v1483_v0  ;;  %1292 = vmatmul.mubr.msk.f32.gmra.mxu0 %vm39_vm1, %v30_v48 }
  0x14   :  { %1294 = vmatprep.mubr.msk.f32.mxu0 %vm39_vm1, %v31_v49 }
  0x17   :  { %1295 = vmatmul.mubr.msk.f32.gmra.mxu0 %vm39_vm1, %v32_v50 }
  0x18   :  { %1297 = vmatprep.mubr.msk.f32.mxu0 %vm39_vm1, %v33_v51 }
  0x1b   :  { %1298 = vmatmul.mubr.msk.f32.gmra.mxu0 %vm39_vm1, %v34_v52 }
  0x1c   :  { %1330 = vmatprep.mubr.msk.f32.mxu0 %vm1484_vm0, %v1483_v0 }
  0xc7   :  { %v1290_v10 = vpop.f32.mrf.mxu0 }
  0xc8   :  { %v136_v33 = vadd.f32 %v1290_v10, %v1591_v11 }
  0xc9   :  { %v130_v12 = vpop.f32.mrf.mxu0 }
  0xca   :  { %v131_v13 = vadd.f32 %v1591_v11, %v130_v12  ;;  %v250_v14 = vpop.f32.mrf.mxu1 }
  0xcc   :  { %v254_v15 = vadd.f32 %v250_v14, %v131_v13  ;;  %v1310_v16 = vpop.f32.mrf.mxu1 }
  0xce   :  { %1419 = vtanh.f32 %v254_v15  ;;  %v1205_v19 = vmul.f32 -1.442695, %v254_v15 }
  0xd0   :  { %1421 = vpow2.f32 %v1205_v19 }
  0xd3   :  { %v1293_v57 = vpop.f32.mrf.mxu0 }
  0xd5   :  { %v140_v58 = vpop.f32.mrf.mxu0 }
  0xd6   :  { %v141_v63 = vadd.f32 %v1591_v11, %v140_v58 }
  0xd7   :  { %v1655_v59 = vpop.f32.mrf.mxu0 }
  0xd9   :  { %v1657_v60 = vpop.f32.mrf.mxu0 }
  0xdb   :  { %v1420_v17 = vpop.eup %1419  ;;  %v1659_v61 = vpop.f32.mrf.mxu0 }
  0xdc   :  { %268 = vrot.lane.b32.xlu0 %v1420_v17, %s1485_s12 }
  0xdd   :  { %v1422_v20 = vpop.eup %1421  ;;  %v1661_v62 = vpop.f32.mrf.mxu0 }
  0xde   :  { %v258_v21 = vadd.f32 1.0, %v1422_v20 }
  0xe0   :  { %263 = vrot.lane.b32.xlu0 %v178_v18, %s1485_s12  ;;  %1423 = vrcp.f32 %v258_v21 }
  0xed   :  { %v1424_v22 = vpop.eup %1423 }
 0x14e   :  { %v269_v23 = vpop.permute.xlu0 %268 }
 0x14f   :  { %v271_v24 = vmul.f32 %v1424_v22, %v269_v23  ;;  %v146_v23 = vadd.f32 %v1293_v57, %v1591_v11 }
 0x151   :  { %273 = vrot.lane.b32.xlu1 %v271_v24, %s1485_s12 }
 0x152   :  { %v264_v25 = vpop.permute.xlu0 %263 }
 0x153   :  { %v266_v26 = vmul.f32 %v1424_v22, %v264_v25 }
 0x1c3   :  { %v274_v27 = vpop.permute.xlu1 %273 }
 0x1c4   :  { %v276_v28 = vadd.f32 %v274_v27, %v266_v26 }
 0x1c6   :  { %1425 = vtanh.f32 %v276_v28 }
 0x1d3   :  { %v1426_v29 = vpop.eup %1425 }
 0x1d4   :  { %279 = vrot.lane.b32.xlu1 %v1426_v29, %s1485_s12 }
 0x246   :  { %v280_v30 = vpop.permute.xlu1 %279 }
 0x247   :  { %v282_v31 = vmul.f32 %v1424_v22, %v280_v30 }
 0x249   :  { %286 = vrot.lane.b32.xlu0 %v282_v31, %s1486_s1 }
 0x2bb   :  { %v287_v32 = vpop.permute.xlu0 %286 }
 0x2bc   :  { %1320 = vmatmul.mubr.msk.f32.vlgmr.msra.gmra.mxu1 %vm180_vm2, %v287_v32 }
 0x2bd   :  { %1334 = vmatpush3.msra.mxu1 %v1527_v2  ;;  %1341 = vmatprep.mubr.msk.f32.mxu1 %vm1484_vm0, %v1483_v0 }
 0x2be   :  { %1335 = vmatprep.subr.mxu1 %v1483_v0 }
 0x2bf   :  { %1336 = vmatpush3.msra.mxu1 %v1538_v4 }
 0x2c0   :  { %1337 = vmatprep.subr.mxu1 %v1483_v0 }
 0x2c1   :  { %1338 = vmatpush3.msra.mxu1 %v1551_v7 }
 0x2c2   :  { %1339 = vmatprep.subr.mxu1 %v1483_v0 }
 0x2c3   :  { %1340 = vmatpush3.msra.mxu1 %v1559_v8 }
 0x2c4   :  { %1355 = vmatprep.subr.mxu1 %v1483_v0 }
 0x37c   :  { %v356_v34 = vpop.f32.mrf.mxu1 }
 0x37d   :  { %v360_v35 = vadd.f32 %v356_v34, %v136_v33 }
 0x37e   :  { %v1321_v36 = vpop.f32.mrf.mxu1 }
 0x37f   :  { %1427 = vtanh.f32 %v360_v35  ;;  %v1207_v38 = vmul.f32 -1.442695, %v360_v35 }
 0x381   :  { %1429 = vpow2.f32 %v1207_v38 }
 0x38c   :  { %v1428_v37 = vpop.eup %1427 }
 0x38d   :  { %370 = vrot.lane.b32.xlu1 %v1428_v37, %s1485_s12 }
 0x38e   :  { %v1430_v39 = vpop.eup %1429 }
 0x38f   :  { %v364_v40 = vadd.f32 1.0, %v1430_v39 }
 0x391   :  { %1431 = vrcp.f32 %v364_v40 }
 0x39e   :  { %v1432_v41 = vpop.eup %1431 }
 0x39f   :  { %v368_v44 = vmul.f32 %v1432_v41, %v276_v28 }
 0x3ff   :  { %v371_v42 = vpop.permute.xlu1 %370 }
 0x400   :  { %v373_v43 = vmul.f32 %v1432_v41, %v371_v42 }
 0x402   :  { %375 = vrot.lane.b32.xlu0 %v373_v43, %s1485_s12 }
 0x474   :  { %v376_v45 = vpop.permute.xlu0 %375 }
 0x475   :  { %v378_v46 = vadd.f32 %v376_v45, %v368_v44 }
 0x477   :  { %1433 = vtanh.f32 %v378_v46 }
 0x484   :  { %v1434_v53 = vpop.eup %1433 }
 0x485   :  { %381 = vrot.lane.b32.xlu1 %v1434_v53, %s1485_s12 }
 0x4f7   :  { %v382_v54 = vpop.permute.xlu1 %381 }
 0x4f8   :  { %v384_v55 = vmul.f32 %v1432_v41, %v382_v54  ;;  %v151_v41 = vadd.f32 %v1591_v11, %v1657_v60 }
 0x4fa   :  { %388 = vrot.lane.b32.xlu0 %v384_v55, %s1486_s1 }
 0x56c   :  { %v389_v56 = vpop.permute.xlu0 %388 }
 0x56d   :  { %1331 = vmatmul.mubr.msk.f32.vlgmr.msra.gmra.mxu0 %vm180_vm2, %v389_v56 }
 0x56e   :  { %1345 = vmatpush3.msra.mxu0 %v1527_v2  ;;  %1352 = vmatprep.mubr.msk.f32.mxu0 %vm1484_vm0, %v1483_v0 }
 0x56f   :  { %1346 = vmatprep.subr.mxu0 %v1483_v0 }
 0x570   :  { %1347 = vmatpush3.msra.mxu0 %v1538_v4 }
 0x571   :  { %1348 = vmatprep.subr.mxu0 %v1483_v0 }
 0x572   :  { %1349 = vmatpush3.msra.mxu0 %v1551_v7 }
 0x573   :  { %1350 = vmatprep.subr.mxu0 %v1483_v0 }
 0x574   :  { %1351 = vmatpush3.msra.mxu0 %v1559_v8 }
 0x575   :  { %1366 = vmatprep.subr.mxu0 %v1483_v0 }
 0x62d   :  { %v458_v1 = vpop.f32.mrf.mxu0 }
 0x62e   :  { %v462_v3 = vadd.f32 %v458_v1, %v141_v63 }
 0x62f   :  { %v1332_v5 = vpop.f32.mrf.mxu0 }
 0x630   :  { %1435 = vtanh.f32 %v462_v3  ;;  %v1209_v9 = vmul.f32 -1.442695, %v462_v3 }
 0x632   :  { %1437 = vpow2.f32 %v1209_v9 }
 0x63d   :  { %v1436_v6 = vpop.eup %1435 }
 0x63e   :  { %472 = vrot.lane.b32.xlu1 %v1436_v6, %s1485_s12 }
 0x63f   :  { %v1438_v10 = vpop.eup %1437 }
 0x640   :  { %v466_v12 = vadd.f32 1.0, %v1438_v10 }
 0x642   :  { %1439 = vrcp.f32 %v466_v12 }
 0x64f   :  { %v1440_v13 = vpop.eup %1439 }
 0x650   :  { %v470_v16 = vmul.f32 %v1440_v13, %v378_v46 }
 0x6b0   :  { %v473_v14 = vpop.permute.xlu1 %472 }
 0x6b1   :  { %v475_v15 = vmul.f32 %v1440_v13, %v473_v14 }
 0x6b3   :  { %477 = vrot.lane.b32.xlu0 %v475_v15, %s1485_s12 }
 0x725   :  { %v478_v17 = vpop.permute.xlu0 %477 }
 0x726   :  { %v480_v18 = vadd.f32 %v478_v17, %v470_v16  ;;  %v161_v17 = vadd.f32 %v1591_v11, %v1661_v62 }
 0x728   :  { %1441 = vtanh.f32 %v480_v18 }
 0x735   :  { %v1442_v19 = vpop.eup %1441 }
 0x736   :  { %483 = vrot.lane.b32.xlu1 %v1442_v19, %s1485_s12 }
 0x7a8   :  { %v484_v20 = vpop.permute.xlu1 %483 }
 0x7a9   :  { %v486_v21 = vmul.f32 %v1440_v13, %v484_v20 }
 0x7ab   :  { %490 = vrot.lane.b32.xlu0 %v486_v21, %s1486_s1 }
 0x81d   :  { %v491_v22 = vpop.permute.xlu0 %490 }
 0x81e   :  { %1342 = vmatmul.mubr.msk.f32.vlgmr.msra.gmra.mxu1 %vm180_vm2, %v491_v22 }
 0x81f   :  { %1356 = vmatpush3.msra.mxu1 %v1527_v2  ;;  %1363 = vmatprep.mubr.msk.f32.mxu1 %vm1484_vm0, %v1483_v0 }
 0x820   :  { %1357 = vmatprep.subr.mxu1 %v1483_v0 }
 0x821   :  { %1358 = vmatpush3.msra.mxu1 %v1538_v4 }
 0x822   :  { %1359 = vmatprep.subr.mxu1 %v1483_v0 }
 0x823   :  { %1360 = vmatpush3.msra.mxu1 %v1551_v7 }
 0x824   :  { %1361 = vmatprep.subr.mxu1 %v1483_v0 }
 0x825   :  { %1362 = vmatpush3.msra.mxu1 %v1559_v8 }
 0x826   :  { %1377 = vmatprep.subr.mxu1 %v1483_v0 }
 0x8de   :  { %v560_v24 = vpop.f32.mrf.mxu1 }
 0x8df   :  { %v564_v25 = vadd.f32 %v560_v24, %v146_v23 }
 0x8e0   :  { %v1343_v26 = vpop.f32.mrf.mxu1 }
 0x8e1   :  { %1443 = vtanh.f32 %v564_v25  ;;  %v1211_v28 = vmul.f32 -1.442695, %v564_v25 }
 0x8e3   :  { %1445 = vpow2.f32 %v1211_v28 }
 0x8ee   :  { %v1444_v27 = vpop.eup %1443 }
 0x8ef   :  { %574 = vrot.lane.b32.xlu1 %v1444_v27, %s1485_s12 }
 0x8f0   :  { %v1446_v29 = vpop.eup %1445 }
 0x8f1   :  { %v568_v30 = vadd.f32 1.0, %v1446_v29 }
 0x8f3   :  { %1447 = vrcp.f32 %v568_v30 }
 0x900   :  { %v1448_v31 = vpop.eup %1447 }
 0x901   :  { %v572_v34 = vmul.f32 %v1448_v31, %v480_v18 }
 0x961   :  { %v575_v32 = vpop.permute.xlu1 %574 }
 0x962   :  { %v577_v33 = vmul.f32 %v1448_v31, %v575_v32 }
 0x964   :  { %579 = vrot.lane.b32.xlu0 %v577_v33, %s1485_s12 }
 0x9d6   :  { %v580_v35 = vpop.permute.xlu0 %579 }
 0x9d7   :  { %v582_v36 = vadd.f32 %v580_v35, %v572_v34  ;;  %v166_v34 = vadd.f32 %v1659_v61, %v1591_v11  ;;  %v1000_v61 = vld [vmem:[%s1782_s4 + $0x18] sm:$0xff] }
 0x9d9   :  { %1449 = vtanh.f32 %v582_v36 }
 0x9e6   :  { %v1450_v37 = vpop.eup %1449 }
 0x9e7   :  { %585 = vrot.lane.b32.xlu1 %v1450_v37, %s1485_s12 }
 0xa59   :  { %v586_v38 = vpop.permute.xlu1 %585 }
 0xa5a   :  { %v588_v39 = vmul.f32 %v1448_v31, %v586_v38 }
 0xa5c   :  { %592 = vrot.lane.b32.xlu0 %v588_v39, %s1486_s1 }
 0xace   :  { %v593_v40 = vpop.permute.xlu0 %592 }
 0xacf   :  { %1353 = vmatmul.mubr.msk.f32.vlgmr.msra.gmra.mxu0 %vm180_vm2, %v593_v40 }
 0xad0   :  { %1367 = vmatpush3.msra.mxu0 %v1527_v2  ;;  %1374 = vmatprep.mubr.msk.f32.mxu0 %vm1484_vm0, %v1483_v0 }
 0xad1   :  { %1368 = vmatprep.subr.mxu0 %v1483_v0 }
 0xad2   :  { %1369 = vmatpush3.msra.mxu0 %v1538_v4 }
 0xad3   :  { %1370 = vmatprep.subr.mxu0 %v1483_v0 }
 0xad4   :  { %1371 = vmatpush3.msra.mxu0 %v1551_v7 }
 0xad5   :  { %1372 = vmatprep.subr.mxu0 %v1483_v0 }
 0xad6   :  { %1373 = vmatpush3.msra.mxu0 %v1559_v8 }
 0xad7   :  { %1388 = vmatprep.subr.mxu0 %v1483_v0 }
 0xb8f   :  { %v662_v42 = vpop.f32.mrf.mxu0 }
 0xb90   :  { %v666_v43 = vadd.f32 %v662_v42, %v151_v41 }
 0xb91   :  { %v1354_v44 = vpop.f32.mrf.mxu0 }
 0xb92   :  { %1451 = vtanh.f32 %v666_v43  ;;  %v1213_v46 = vmul.f32 -1.442695, %v666_v43 }
 0xb94   :  { %1453 = vpow2.f32 %v1213_v46 }
 0xb9f   :  { %v1452_v45 = vpop.eup %1451 }
 0xba0   :  { %676 = vrot.lane.b32.xlu1 %v1452_v45, %s1485_s12 }
 0xba1   :  { %v1454_v47 = vpop.eup %1453 }
 0xba2   :  { %v670_v48 = vadd.f32 1.0, %v1454_v47  ;;  %v999_v47 = vld [vmem:[%s1782_s4 + $0x10] sm:$0xff] }
 0xba4   :  { %1455 = vrcp.f32 %v670_v48  ;;  %v998_v48 = vld [vmem:[%s1782_s4 + $0x8] sm:$0xff] }
 0xbb1   :  { %v1456_v49 = vpop.eup %1455 }
 0xbb2   :  { %v674_v52 = vmul.f32 %v1456_v49, %v582_v36 }
 0xc12   :  { %v677_v50 = vpop.permute.xlu1 %676 }
 0xc13   :  { %v679_v51 = vmul.f32 %v1456_v49, %v677_v50 }
 0xc15   :  { %681 = vrot.lane.b32.xlu0 %v679_v51, %s1485_s12  ;;  %v1004_v51 = vld [vmem:[%s1782_s4 + $0x38] sm:$0xff] }
 0xc87   :  { %v682_v53 = vpop.permute.xlu0 %681 }
 0xc88   :  { %v684_v54 = vadd.f32 %v682_v53, %v674_v52 }
 0xc8a   :  { %1457 = vtanh.f32 %v684_v54 }
 0xc97   :  { %v1458_v55 = vpop.eup %1457 }
 0xc98   :  { %687 = vrot.lane.b32.xlu1 %v1458_v55, %s1485_s12  ;;  %v1003_v55 = vld [vmem:[%s1782_s4 + $0x30] sm:$0xff] }
 0xd0a   :  { %v688_v56 = vpop.permute.xlu1 %687 }
 0xd0b   :  { %v690_v57 = vmul.f32 %v1456_v49, %v688_v56  ;;  %v997_v49 = vld [vmem:[%s1782_s4] sm:$0xff]  ;;  %v1002_v56 = vld [vmem:[%s1782_s4 + $0x28] sm:$0xff] }
 0xd0d   :  { %694 = vrot.lane.b32.xlu0 %v690_v57, %s1486_s1  ;;  %v1001_v57 = vld [vmem:[%s1782_s4 + $0x20] sm:$0xff]  ;;  %s1488_s4 = smov 127  }
 0xd7f   :  { %v695_v58 = vpop.permute.xlu0 %694 }
 0xd80   :  { %1364 = vmatmul.mubr.msk.f32.vlgmr.msra.gmra.mxu1 %vm180_vm2, %v695_v58  ;;  %v1220_v58 = vld [vmem:[%s1781_s3 + $0x1] ss:$0 sm:$0xff] }
 0xd81   :  { %1378 = vmatpush3.msra.mxu1 %v1527_v2  ;;  %1385 = vmatprep.mubr.msk.f32.mxu1 %vm1484_vm0, %v1483_v0  ;;  %v156_v2 = vadd.f32 %v1655_v59, %v1591_v11 }
 0xd82   :  { %1379 = vmatprep.subr.mxu1 %v1483_v0 }
 0xd83   :  { %1380 = vmatpush3.msra.mxu1 %v1538_v4 }
 0xd84   :  { %1381 = vmatprep.subr.mxu1 %v1483_v0 }
 0xd85   :  { %1382 = vmatpush3.msra.mxu1 %v1551_v7 }
 0xd86   :  { %1383 = vmatprep.subr.mxu1 %v1483_v0 }
 0xd87   :  { %1384 = vmatpush3.msra.mxu1 %v1559_v8 }
 0xd88   :  { %1399 = vmatprep.subr.mxu1 %v1483_v0 }
 0xe40   :  { %v764_v60 = vpop.f32.mrf.mxu1 }
 0xe41   :  { %v768_v63 = vadd.f32 %v764_v60, %v156_v2 }
 0xe42   :  { %v1365_v1 = vpop.f32.mrf.mxu1 }
 0xe43   :  { %1459 = vtanh.f32 %v768_v63  ;;  %v1215_v4 = vmul.f32 -1.442695, %v768_v63 }
 0xe45   :  { %1461 = vpow2.f32 %v1215_v4  ;;  %v1222_v4 = vld [vmem:[%s1781_s3 + $0x2] ss:$0 sm:$0xff] }
 0xe50   :  { %v1460_v3 = vpop.eup %1459 }
 0xe51   :  { %778 = vrot.lane.b32.xlu1 %v1460_v3, %s1485_s12  ;;  %v1487_v3 = vmov 0  }
 0xe52   :  { %v1462_v5 = vpop.eup %1461  ;;  %1417 = vset.pattern.permute.xlu1 %v1487_v3  ;;  %1418 = vset.pattern.permute.xlu0 %v1487_v3 }
 0xe53   :  { %v772_v7 = vadd.f32 1.0, %v1462_v5 }
 0xe55   :  { %1463 = vrcp.f32 %v772_v7 }
 0xe62   :  { %v1464_v6 = vpop.eup %1463 }
 0xe63   :  { %v776_v10 = vmul.f32 %v1464_v6, %v684_v54 }
 0xec3   :  { %v779_v9 = vpop.permute.xlu1 %778 }
 0xec4   :  { %v781_v8 = vmul.f32 %v1464_v6, %v779_v9 }
 0xec6   :  { %783 = vrot.lane.b32.xlu0 %v781_v8, %s1485_s12 }
 0xf38   :  { %v784_v12 = vpop.permute.xlu0 %783 }
 0xf39   :  { %v786_v59 = vadd.f32 %v784_v12, %v776_v10 }
 0xf3b   :  { %1465 = vtanh.f32 %v786_v59 }
 0xf48   :  { %v1466_v13 = vpop.eup %1465 }
 0xf49   :  { %789 = vrot.lane.b32.xlu1 %v1466_v13, %s1485_s12 }
 0xfbb   :  { %v790_v14 = vpop.permute.xlu1 %789 }
 0xfbc   :  { %v792_v15 = vmul.f32 %v1464_v6, %v790_v14 }
 0xfbe   :  { %796 = vrot.lane.b32.xlu0 %v792_v15, %s1486_s1 }
0x1030   :  { %v797_v16 = vpop.permute.xlu0 %796 }
0x1031   :  { %1375 = vmatmul.mubr.msk.f32.vlgmr.msra.gmra.mxu0 %vm180_vm2, %v797_v16 }
0x1032   :  { %1396 = vmatprep.mubr.msk.f32.mxu0 %vm1484_vm0, %v1483_v0  ;;  %1389 = vmatpush3.msra.mxu0 %v1000_v61 }
0x1033   :  { %1390 = vmatprep.subr.mxu0 %v1483_v0 }
0x1034   :  { %1391 = vmatpush3.msra.mxu0 %v999_v47 }
0x1035   :  { %1392 = vmatprep.subr.mxu0 %v1483_v0 }
0x1036   :  { %1393 = vmatpush3.msra.mxu0 %v998_v48 }
0x1037   :  { %1394 = vmatprep.subr.mxu0 %v1483_v0 }
0x1038   :  { %1395 = vmatpush3.msra.mxu0 %v997_v49 }
0x10f1   :  { %v866_v18 = vpop.f32.mrf.mxu0 }
0x10f2   :  { %v870_v19 = vadd.f32 %v866_v18, %v161_v17 }
0x10f3   :  { %v1376_v20 = vpop.f32.mrf.mxu0 }
0x10f4   :  { %1467 = vtanh.f32 %v870_v19  ;;  %v1217_v22 = vmul.f32 -1.442695, %v870_v19 }
0x10f6   :  { %1469 = vpow2.f32 %v1217_v22 }
0x1101   :  { %v1468_v21 = vpop.eup %1467 }
0x1102   :  { %880 = vrot.lane.b32.xlu1 %v1468_v21, %s1485_s12 }
0x1103   :  { %v1470_v23 = vpop.eup %1469 }
0x1104   :  { %v874_v24 = vadd.f32 1.0, %v1470_v23 }
0x1106   :  { %1471 = vrcp.f32 %v874_v24 }
0x1113   :  { %v1472_v25 = vpop.eup %1471 }
0x1114   :  { %v878_v28 = vmul.f32 %v1472_v25, %v786_v59 }
0x1174   :  { %v881_v26 = vpop.permute.xlu1 %880 }
0x1175   :  { %v883_v27 = vmul.f32 %v1472_v25, %v881_v26 }
0x1177   :  { %885 = vrot.lane.b32.xlu0 %v883_v27, %s1485_s12 }
0x11e9   :  { %v886_v29 = vpop.permute.xlu0 %885 }
0x11ea   :  { %v888_v62 = vadd.f32 %v886_v29, %v878_v28 }
0x11ec   :  { %1473 = vtanh.f32 %v888_v62 }
0x11f9   :  { %v1474_v30 = vpop.eup %1473 }
0x11fa   :  { %891 = vrot.lane.b32.xlu1 %v1474_v30, %s1485_s12 }
0x126c   :  { %v892_v31 = vpop.permute.xlu1 %891 }
0x126d   :  { %v894_v32 = vmul.f32 %v1472_v25, %v892_v31 }
0x126f   :  { %898 = vrot.lane.b32.xlu0 %v894_v32, %s1486_s1 }
0x12e1   :  { %v899_v33 = vpop.permute.xlu0 %898 }
0x12e2   :  { %1386 = vmatmul.mubr.msk.f32.vlgmr.msra.gmra.mxu1 %vm180_vm2, %v899_v33 }
0x12e3   :  { %1407 = vmatprep.mubr.msk.f32.mxu1 %vm1484_vm0, %v1483_v0  ;;  %1400 = vmatpush3.msra.mxu1 %v1004_v51 }
0x12e4   :  { %1401 = vmatprep.subr.mxu1 %v1483_v0 }
0x12e5   :  { %1402 = vmatpush3.msra.mxu1 %v1003_v55 }
0x12e6   :  { %1403 = vmatprep.subr.mxu1 %v1483_v0 }
0x12e7   :  { %1404 = vmatpush3.msra.mxu1 %v1002_v56 }
0x12e8   :  { %1405 = vmatprep.subr.mxu1 %v1483_v0 }
0x12e9   :  { %1406 = vmatpush3.msra.mxu1 %v1001_v57 }
0x13a2   :  { %v968_v35 = vpop.f32.mrf.mxu1 }
0x13a3   :  { %v972_v36 = vadd.f32 %v968_v35, %v166_v34 }
0x13a4   :  { %v1387_v37 = vpop.f32.mrf.mxu1 }
0x13a5   :  { %1475 = vtanh.f32 %v972_v36  ;;  %v1219_v39 = vmul.f32 -1.442695, %v972_v36 }
0x13a7   :  { %1477 = vpow2.f32 %v1219_v39 }
0x13b2   :  { %v1476_v38 = vpop.eup %1475 }
0x13b3   :  { %982 = vrot.lane.b32.xlu1 %v1476_v38, %s1485_s12 }
0x13b4   :  { %v1478_v40 = vpop.eup %1477 }
0x13b5   :  { %v976_v41 = vadd.f32 1.0, %v1478_v40 }
0x13b7   :  { %1479 = vrcp.f32 %v976_v41 }
0x13c4   :  { %v1480_v42 = vpop.eup %1479 }
0x13c5   :  { %v980_v45 = vmul.f32 %v1480_v42, %v888_v62 }
0x1425   :  { %v983_v43 = vpop.permute.xlu1 %982 }
0x1426   :  { %v985_v44 = vmul.f32 %v1480_v42, %v983_v43 }
0x1428   :  { %987 = vrot.lane.b32.xlu0 %v985_v44, %s1485_s12 }
0x149a   :  { %v988_v46 = vpop.permute.xlu0 %987 }
0x149b   :  { %v990_v11 = vadd.f32 %v988_v46, %v980_v45 }
0x149d   :  { %1481 = vtanh.f32 %v990_v11 }
0x14aa   :  { %v1482_v50 = vpop.eup %1481 }
0x14ab   :  { %993 = vrot.lane.b32.xlu1 %v1482_v50, %s1485_s12 }
0x151d   :  { %v994_v52 = vpop.permute.xlu1 %993 }
0x151e   :  { %v996_v53 = vmul.f32 %v1480_v42, %v994_v52 }
0x1520   :  { %1012 = vrot.lane.b32.xlu0 %v996_v53, %s1486_s1 }
0x1592   :  { %v1013_v54 = vpop.permute.xlu0 %1012 }
0x1593   :  { %1397 = vmatmul.mubr.msk.f32.vlgmr.msra.gmra.mxu0 %vm180_vm2, %v1013_v54  ;;  %v1185_v14 = vsel %vm180_vm2, %v1013_v54, %v990_v11 }
0x1653   :  { %v1082_v2 = vpop.f32.mrf.mxu0 }
0x1654   :  { %v1083_v60 = vadd.f32 %v1220_v58, %v1082_v2 }
0x1655   :  { %v1398_v63 = vpop.f32.mrf.mxu0 }
0x1656   :  { %v1086_v1 = vmax.f32 %v1083_v60, 0.0 }
0x1658   :  { %1408 = vmatmul.mubr.msk.f32.vlgmr.msra.gmra.mxu1 %vm180_vm2, %v1086_v1 }
0x1718   :  { %v1160_v5 = vpop.f32.mrf.mxu1 }
0x1719   :  { %v1161_v0 = vadd.f32 %v1222_v4, %v1160_v5 }
0x171a   :  { %v1409_v7 = vpop.f32.mrf.mxu1 }
0x171b   :  { %1165 = vrot.lane.b32.xlu1 %v1161_v0, %s1488_s4 }
0x171f   :  { %1176 = vperm.xlu1 %1417, %v1161_v0  }
0x178d   :  { %v1166_v6 = vpop.permute.xlu1 %1165 }
0x178e   :  { %v1169_v9 = vsel %vm1168_vm3, %v1166_v6, 0.0 }
0x178f   :  { %1170 = vadd.xlane.f32.xlu0 %v1169_v9 }
0x179a   :  { %v1177_v59 = vpop.permute.xlu1 %1176 }
0x1818   :  { %v1171_v8 = vpop.xlane.xlu0 %1170 }
0x1819   :  { %v1173_v10 = vmul.f32 0.25, %v1171_v8 }
0x181b   :  { %v1174_v12 = vsub.f32 %v1161_v0, %v1173_v10 }
0x181d   :  { %v1179_v13 = vadd.f32 %v1177_v59, %v1174_v12 }
0x181f   :  { %1182 = vrot.lane.b32.xlu1 %v1179_v13, %s1489_s19 }
0x1891   :  { %v1183_v15 = vpop.permute.xlu1 %1182 }
0x1892   :  { %v1187_v16 = vsel %vm1186_vm4, %v1185_v14, %v1183_v15 }
0x1893   :  { %v1189_v17 = vsel %vm1188_vm5, %v1187_v16, 0.0 }
0x1894   :  { %1190 = vst [vmem:[%s1783_s5] sm:$0xff] %v1189_v17 }

</bundles_post_ra>
